<compile_context>
chip_gen: v6e
topology: v6e:2x2x1
jax: 0.10.0
libtpu: 0.0.40
codegen_flags: <defaults>
</compile_context>

<pallas_src>
import math

import jax
import jax.numpy as jnp
from jax import lax
from jax.experimental import pallas as pl
from jax.experimental.pallas import tpu as pltpu


C_IN = 32
C_OUT = 6          # 1 (score) + 4 (loc) + 1 (angle)
SCOPE = 512.0


def _output_kernel(x_ref, wt_ref, b_ref, score_ref, geo_ref):
    # x_ref:     (1, 32, T)  activation tile (NCHW-flattened: channels x spatial)
    # wt_ref:    (6, 32)     fused 1x1-conv weights, transposed
    # b_ref:     (6, 1)      fused biases (column vector)
    # score_ref: (1, 1, T)   sigmoid(conv1(x))
    # geo_ref:   (1, 5, T)   [sigmoid(conv2(x))*512, (sigmoid(conv3(x))-0.5)*pi]
    x = x_ref[0]                                                       # (32, T)
    z = jnp.dot(wt_ref[...], x, preferred_element_type=jnp.float32)   # (6, T)
    z = z + b_ref[...]                                                 # (6,1) lane-broadcast
    s = jax.nn.sigmoid(z)

    # Per-output-channel affine as compile-time constants on a (6,1) column,
    # broadcast along lanes by the mul/add (cheap VPU work, hidden under DMA):
    #   row 0     -> score: *1   + 0
    #   rows 1..4 -> loc:   *512 + 0
    #   row 5     -> angle: *pi  - pi/2
    row = lax.broadcasted_iota(jnp.int32, (C_OUT, 1), 0)
    scale = jnp.where(row == 0, 1.0, jnp.where(row == 5, math.pi, SCOPE))
    offset = jnp.where(row == 5, -0.5 * math.pi, 0.0)
    out = s * scale + offset                                           # (6, T) f32

    score_ref[0] = out[0:1, :].astype(score_ref.dtype)
    geo_ref[0] = out[1:6, :].astype(geo_ref.dtype)


def output_forward(x_nchw, w_fused, b_fused, *, max_tile=32768):
    """x_nchw: (N, 32, H, W) float32.

    Returns (score (N,1,H,W), geo (N,5,H,W)) matching the PyTorch `Output` module.
    """
    N, C, H, W = x_nchw.shape
    assert C == C_IN
    HW = H * W
    x3 = x_nchw.reshape(N, C_IN, HW)        # free reshape (contiguous NCHW)

    # Tile over the spatial (lane) axis.  Full-extent block when small; otherwise
    # big 128-multiple tiles (ragged tail handled by Pallas partial blocks).
    if HW <= max_tile:
        tile = HW
    else:
        tile = max_tile - (max_tile % 128)
    n_tiles = pl.cdiv(HW, tile)

    wt = jnp.transpose(w_fused).astype(jnp.float32)   # (6, 32)
    b2 = b_fused.reshape(C_OUT, 1).astype(jnp.float32)

    score, geo = pl.pallas_call(
        _output_kernel,
        out_shape=(
            jax.ShapeDtypeStruct((N, 1, HW), jnp.float32),
            jax.ShapeDtypeStruct((N, 5, HW), jnp.float32),
        ),
        grid_spec=pltpu.PrefetchScalarGridSpec(
            num_scalar_prefetch=0,
            grid=(N, n_tiles),
            in_specs=[
                pl.BlockSpec((1, C_IN, tile), lambda n, t: (n, 0, t)),
                pl.BlockSpec((C_OUT, C_IN), lambda n, t: (0, 0)),
                pl.BlockSpec((C_OUT, 1), lambda n, t: (0, 0)),
            ],
            out_specs=[
                pl.BlockSpec((1, 1, tile), lambda n, t: (n, 0, t)),
                pl.BlockSpec((1, 5, tile), lambda n, t: (n, 0, t)),
            ],
        ),
        compiler_params=pltpu.CompilerParams(
            dimension_semantics=("parallel", "parallel"),
            vmem_limit_bytes=32 * 1024 * 1024,
        ),
    )(x3, wt, b2)

    score = score.reshape(N, 1, H, W)
    geo = geo.reshape(N, 5, H, W)
    return score, geo


def init_params(key):
    """Kaiming-normal (fan_out, relu) init for the 1x1 convs, zero bias."""
    k1, k2, k3 = jax.random.split(key, 3)

    def kaiming_1x1(k, c_out, c_in):
        fan_out = c_out * 1 * 1
        std = math.sqrt(2.0 / fan_out)
        # torch weight is (c_out, c_in, 1, 1); we store (c_in, c_out)
        return jax.random.normal(k, (c_in, c_out), dtype=jnp.float32) * std

    w1 = kaiming_1x1(k1, 1, C_IN)   # score conv
    w2 = kaiming_1x1(k2, 4, C_IN)   # loc conv
    w3 = kaiming_1x1(k3, 1, C_IN)   # angle conv
    w_fused = jnp.concatenate([w1, w2, w3], axis=1)   # (32, 6)
    b_fused = jnp.zeros((C_OUT,), dtype=jnp.float32)
    return w_fused, b_fused


def _reference(x, w_fused, b_fused):
    z = jnp.einsum('nchw,co->nohw', x, w_fused) + b_fused[None, :, None, None]
    s = jax.nn.sigmoid(z)
    score_r = s[:, 0:1]
    loc_r = s[:, 1:5] * SCOPE
    angle_r = (s[:, 5:6] - 0.5) * math.pi
    return score_r, jnp.concatenate([loc_r, angle_r], axis=1)


if __name__ == "__main__":
    key = jax.random.PRNGKey(0)
    pkey, xkey1, xkey2, xkey3 = jax.random.split(key, 4)
    w_fused, b_fused = init_params(pkey)

    # Test 1: small spatial extent -> single full-extent block per batch element.
    x = jax.random.normal(xkey1, (2, C_IN, 8, 8), dtype=jnp.float32)
    score, geo = output_forward(x, w_fused, b_fused)
    jax.block_until_ready((score, geo))

    score_r, geo_r = _reference(x, w_fused, b_fused)
    assert score.shape == (2, 1, 8, 8) and geo.shape == (2, 5, 8, 8)
    assert jnp.allclose(score, score_r, atol=1e-5), "score mismatch"
    assert jnp.allclose(geo, geo_r, atol=1e-3), "geo mismatch"

    # Test 2: exercise the multi-tile spatial path (HW=256, tile=128 -> 2 steps).
    x2 = jax.random.normal(xkey2, (1, C_IN, 16, 16), dtype=jnp.float32)
    score2, geo2 = output_forward(x2, w_fused, b_fused, max_tile=128)
    jax.block_until_ready((score2, geo2))

    score2_r, geo2_r = _reference(x2, w_fused, b_fused)
    assert score2.shape == (1, 1, 16, 16) and geo2.shape == (1, 5, 16, 16)
    assert jnp.allclose(score2, score2_r, atol=1e-5), "score mismatch (tiled)"
    assert jnp.allclose(geo2, geo2_r, atol=1e-3), "geo mismatch (tiled)"

    # Test 3: ragged spatial tail (HW=144, tile=128 -> 2 steps, last partial).
    x3 = jax.random.normal(xkey3, (2, C_IN, 12, 12), dtype=jnp.float32)
    score3, geo3 = output_forward(x3, w_fused, b_fused, max_tile=128)
    jax.block_until_ready((score3, geo3))

    score3_r, geo3_r = _reference(x3, w_fused, b_fused)
    assert score3.shape == (2, 1, 12, 12) and geo3.shape == (2, 5, 12, 12)
    assert jnp.allclose(score3, score3_r, atol=1e-5), "score mismatch (ragged)"
    assert jnp.allclose(geo3, geo3_r, atol=1e-3), "geo mismatch (ragged)"

    print("KERNEL_OK")
</pallas_src>

<mosaic_0001>
module attributes {stable_mosaic.version = 11 : i64} {
  func.func @_output_kernel(%arg0: i32, %arg1: i32, %arg2: memref<1x32x64xf32, #tpu.memory_space<vmem>>, %arg3: memref<6x32xf32, #tpu.memory_space<vmem>>, %arg4: memref<6x1xf32, #tpu.memory_space<vmem>>, %arg5: memref<1x1x64xf32, #tpu.memory_space<vmem>>, %arg6: memref<1x5x64xf32, #tpu.memory_space<vmem>>) attributes {dimension_semantics = [#tpu.dimension_semantics<parallel>, #tpu.dimension_semantics<parallel>], iteration_bounds = array<i64: 2, 1>, scalar_prefetch = 0 : i64, scratch_operands = 0 : i64, tpu.core_type = #tpu.core_type<tc>, window_params = [{transform_indices = @transform_0, window_bounds = array<i64: 1, 32, 64>}, {pipeline_mode = #tpu.pipeline_mode<synchronous>, transform_indices = @transform_1, window_bounds = array<i64: 6, 32>}, {pipeline_mode = #tpu.pipeline_mode<synchronous>, transform_indices = @transform_2, window_bounds = array<i64: 6, 1>}, {transform_indices = @transform_3, window_bounds = array<i64: 1, 1, 64>}, {transform_indices = @transform_4, window_bounds = array<i64: 1, 5, 64>}]} {
    %c0 = arith.constant 0 : index
    %c0_0 = arith.constant 0 : index
    %c0_1 = arith.constant 0 : index
    %0 = vector.load %arg2[%c0, %c0_0, %c0_1] : memref<1x32x64xf32, #tpu.memory_space<vmem>>, vector<1x32x64xf32>
    %1 = vector.shape_cast %0 : vector<1x32x64xf32> to vector<32x64xf32>
    %c0_2 = arith.constant 0 : index
    %c0_3 = arith.constant 0 : index
    %2 = vector.load %arg3[%c0_2, %c0_3] : memref<6x32xf32, #tpu.memory_space<vmem>>, vector<6x32xf32>
    %cst = arith.constant dense<0.000000e+00> : vector<6x64xf32>
    %3 = tpu.matmul %2, %1, %cst {dimension_numbers = #tpu.dot_dimension_numbers<[1], [0], [0], [1], [0, 0, 1, 1], [], []>} : vector<6x32xf32>, vector<32x64xf32>, vector<6x64xf32> -> vector<6x64xf32>
    %c0_4 = arith.constant 0 : index
    %c0_5 = arith.constant 0 : index
    %4 = vector.load %arg4[%c0_4, %c0_5] : memref<6x1xf32, #tpu.memory_space<vmem>>, vector<6x1xf32>
    %5 = vector.broadcast %4 : vector<6x1xf32> to vector<6x64xf32>
    %6 = arith.addf %3, %5 : vector<6x64xf32>
    %7 = arith.negf %6 : vector<6x64xf32>
    %8 = math.exp %7 : vector<6x64xf32>
    %cst_6 = arith.constant 1.000000e+00 : f32
    %9 = vector.broadcast %cst_6 : f32 to vector<6x64xf32>
    %10 = arith.addf %9, %8 : vector<6x64xf32>
    %11 = arith.divf %9, %10 : vector<6x64xf32>
    %12 = tpu.iota {dimensions = array<i32: 0>} : vector<6x1xi32>
    %c0_i32 = arith.constant 0 : i32
    %13 = vector.broadcast %c0_i32 : i32 to vector<6x1xi32>
    %14 = arith.cmpi eq, %12, %13 : vector<6x1xi32>
    %c5_i32 = arith.constant 5 : i32
    %15 = vector.broadcast %c5_i32 : i32 to vector<6x1xi32>
    %16 = arith.cmpi eq, %12, %15 : vector<6x1xi32>
    %cst_7 = arith.constant 3.14159274 : f32
    %cst_8 = arith.constant 5.120000e+02 : f32
    %17 = vector.broadcast %cst_7 : f32 to vector<6x1xf32>
    %18 = vector.broadcast %cst_8 : f32 to vector<6x1xf32>
    %19 = arith.select %16, %17, %18 : vector<6x1xi1>, vector<6x1xf32>
    %cst_9 = arith.constant 1.000000e+00 : f32
    %20 = vector.broadcast %cst_9 : f32 to vector<6x1xf32>
    %21 = arith.select %14, %20, %19 : vector<6x1xi1>, vector<6x1xf32>
    %c5_i32_10 = arith.constant 5 : i32
    %22 = vector.broadcast %c5_i32_10 : i32 to vector<6x1xi32>
    %23 = arith.cmpi eq, %12, %22 : vector<6x1xi32>
    %cst_11 = arith.constant -1.57079637 : f32
    %cst_12 = arith.constant 0.000000e+00 : f32
    %24 = vector.broadcast %cst_11 : f32 to vector<6x1xf32>
    %25 = vector.broadcast %cst_12 : f32 to vector<6x1xf32>
    %26 = arith.select %23, %24, %25 : vector<6x1xi1>, vector<6x1xf32>
    %27 = vector.broadcast %21 : vector<6x1xf32> to vector<6x64xf32>
    %28 = arith.mulf %11, %27 : vector<6x64xf32>
    %29 = vector.broadcast %26 : vector<6x1xf32> to vector<6x64xf32>
    %30 = arith.addf %28, %29 : vector<6x64xf32>
    %31 = vector.extract_strided_slice %30 {offsets = [0, 0], sizes = [1, 64], strides = [1, 1]} : vector<6x64xf32> to vector<1x64xf32>
    %c0_13 = arith.constant 0 : index
    %c0_14 = arith.constant 0 : index
    %c0_15 = arith.constant 0 : index
    %32 = vector.load %arg5[%c0_13, %c0_14, %c0_15] : memref<1x1x64xf32, #tpu.memory_space<vmem>>, vector<1x1x64xf32>
    %33 = vector.shape_cast %32 : vector<1x1x64xf32> to vector<1x64xf32>
    %34 = vector.shape_cast %31 : vector<1x64xf32> to vector<1x1x64xf32>
    tpu.vector_store %arg5[%c0_13, %c0_14, %c0_15], %34 {strides = array<i32>} : memref<1x1x64xf32, #tpu.memory_space<vmem>>, vector<1x1x64xf32>,
    %35 = vector.extract_strided_slice %30 {offsets = [1, 0], sizes = [5, 64], strides = [1, 1]} : vector<6x64xf32> to vector<5x64xf32>
    %c0_16 = arith.constant 0 : index
    %c0_17 = arith.constant 0 : index
    %c0_18 = arith.constant 0 : index
    %36 = vector.load %arg6[%c0_16, %c0_17, %c0_18] : memref<1x5x64xf32, #tpu.memory_space<vmem>>, vector<1x5x64xf32>
    %37 = vector.shape_cast %36 : vector<1x5x64xf32> to vector<5x64xf32>
    %38 = vector.shape_cast %35 : vector<5x64xf32> to vector<1x5x64xf32>
    tpu.vector_store %arg6[%c0_16, %c0_17, %c0_18], %38 {strides = array<i32>} : memref<1x5x64xf32, #tpu.memory_space<vmem>>, vector<1x5x64xf32>,
    return
  }
  func.func @transform_0(%arg0: i32, %arg1: i32) -> (i32, i32, i32) {
    %c0_i32 = arith.constant 0 : i32
    %c0_i32_0 = arith.constant 0 : i32
    return %arg0, %c0_i32, %arg1 : i32, i32, i32
  }
  func.func @transform_1(%arg0: i32, %arg1: i32) -> (i32, i32) {
    %c0_i32 = arith.constant 0 : i32
    %c0_i32_0 = arith.constant 0 : i32
    %c0_i32_1 = arith.constant 0 : i32
    return %c0_i32, %c0_i32_0 : i32, i32
  }
  func.func @transform_2(%arg0: i32, %arg1: i32) -> (i32, i32) {
    %c0_i32 = arith.constant 0 : i32
    %c0_i32_0 = arith.constant 0 : i32
    %c0_i32_1 = arith.constant 0 : i32
    return %c0_i32, %c0_i32_0 : i32, i32
  }
  func.func @transform_3(%arg0: i32, %arg1: i32) -> (i32, i32, i32) {
    %c0_i32 = arith.constant 0 : i32
    %c0_i32_0 = arith.constant 0 : i32
    return %arg0, %c0_i32, %arg1 : i32, i32, i32
  }
  func.func @transform_4(%arg0: i32, %arg1: i32) -> (i32, i32, i32) {
    %c0_i32 = arith.constant 0 : i32
    %c0_i32_0 = arith.constant 0 : i32
    return %arg0, %c0_i32, %arg1 : i32, i32, i32
  }
}

</mosaic_0001>

<bundles_post_ra>
// kernel: tpu_custom_call.1
= control target key start
LH: loop header
LB: loop body
LE: loop exit
PB: predicated region body
PF: predicated region fallthrough
CT: control target
= control target key end

     0   :  { %10 = vsyncpa [#allocation3], 0  ;;  %s885_s0 = inlined_call_operand.hbm [shape: f32[2,32,64], index: 0, kind: input, shape index: {}]   ;;  %s886_s1 = inlined_call_operand.vmem [shape: f32[6,32], index: 1, kind: input, shape index: {}]   ;;  %s887_s2 = inlined_call_operand.vmem [shape: f32[6,1], index: 2, kind: input, shape index: {}]   ;;  %s888_s3 = inlined_call_operand.hbm [shape: f32[2,1,64], index: 3, kind: output, shape index: {0}]   ;;  %s889_s4 = inlined_call_operand.vmem [shape: f32[2,5,64], index: 4, kind: output, shape index: {1}]  }
   0x1   :  { %12 = vsyncpa [#allocation3 + $0x1], 0 }
   0x2   :  { %13 = vsyncpa [#allocation4], 0 }
   0x3   :  { %15 = vsyncpa [#allocation4 + $0x1], 0  ;;  %s735_s15 = smov 0   ;;  %s737_s16 = smov 0  }
   0x4   :  { %s739_s17 = smov 0   ;;  %s741_s18 = smov 0  }
   0x5   :  { %s743_s19 = smov 0   ;;  %s745_s20 = smov 0  }
   0x6 LB: > { %s487_s21 = sadd.s32 4294967295, %s700_s20   ;;  %s488_s22 = sadd.s32 4294967294, %s700_s20   ;;  %s700_s20 = sphi %s745_s20, %s21_s20   ;;  %s696_s19 = sphi %s743_s19, %s900_s19   ;;  %s692_s18 = sphi %s741_s18, %s899_s18   ;;  %s688_s17 = sphi %s739_s17, %s898_s17   ;;  %s684_s16 = sphi %s737_s16, %s897_s16   ;;  %s680_s15 = sphi %s735_s15, %s896_s15  }
   0x7   : > { %s33_s23 = sadd.s32 1, %s696_s19  ;;  %s42_s24 = sadd.s32 1, %s688_s17 }
   0x8   : > { %p35_p0 = scmp.ge.s32.totalorder %s33_s23, 2  ;;  %p49_p1 = scmp.ne.s32.totalorder %s688_s17, %s684_s16 }
   0x9   : > { %p50_p2 = scmp.eq.s32.totalorder %s700_s20, 0  ;;  %p55_p3 = scmp.ne.s32.totalorder %s684_s16, %s680_s15 }
   0xa   : > { %s902_s23 = smov (%p35_p0, %s33_s23), 0  ;;  %p56_p5 = scmp.eq.s32.totalorder %s487_s21, 0 }
   0xb   : > { %p776_p4 = por %p50_p2, %p49_p1  ;;  %s37_s26 = ssub.s32 %s696_s19, %s902_s23 }
   0xc   : > { %p123_p6 = scmp.eq.s32.totalorder %s487_s21, 1  ;;  %p40_p7 = scmp.eq.s32.totalorder %s37_s26, 0 }
   0xd   : > { %p782_p8 = por %p56_p5, %p55_p3  ;;  %p129_p10 = scmp.eq.s32.totalorder %s488_s22, 1 }
   0xe   : > { %p786_p9 = por %p123_p6, %p49_p1  ;;  %p531_p13 = scmp.lt.s32.totalorder %s700_s20, 2 }
   0xf   : > { %s791_s29 = scalar_select %p40_p7, %s688_s17, %s42_s24  }
  0x10   : > { %p793_p11 = por %p129_p10, %p55_p3  ;;  %s183_s5 = sand.u32 1, %s688_s17  }
  0x11   : > { %s491_s6 = sshll.u32 %s183_s5, 5  ;;  %s502_s7 = sshll.u32 %s696_s19, 9 }
  0x12   : > { %s194_s10 = scalar_lea.hbm %s885_s0, %s502_s7  ;;  %s187_s11 = scalar_lea.vmem [#allocation2], %s491_s6 }
  0x13   : > { %s195_s12 = sshll.u32 %s187_s11, 4  ;;  %p806_p0 = pnand %p531_p13, %p776_p4  ;;  %s196_s12 = int_to_ptr.vmem [resolvable:$true] %s195_s12 }
  0x14   : > { %p494_p1 = scmp.ge.s32.totalorder %s700_s20, 1  ;;  %s184_s14 = scalar_lea.sflag [#allocation3], %s183_s5 }
  0x15   : > { %p594_p2 = pneg %p806_p0  ;;  %s605_s21 = scalar_lea.vmem %s196_s12, 512 }
  0x16   : > { %p606_p3 = scmp.ne.s32.totalorder %s196_s12, %s605_s21  ;;  %s702_s22 = smov [#allocation2]  }
  0x17   : > { %s610_s24 = sshll.u32 %s702_s22, 4  ;;  %s611_s24 = int_to_ptr.vmem [resolvable:$false] %s610_s24 }
  0x18   : > { %p608_p5 = pnand %p606_p3, %p594_p2  ;;  %s612_s26 = scalar_lea.vmem %s611_s24, 1024 }
  0x19   : > { %p613_p7 = scmp.lt.s32.totalorder %s196_s12, %s611_s24  ;;  %p614_p10 = scmp.lt.s32.totalorder %s612_s26, %s605_s21 }
  0x1a   : > { %p609_p6 = pneg %p608_p5 }
  0x1b   : > { %p615_p12 = por %p614_p10, %p613_p7 }
  0x1d   : > { %p616_p4 = pnand %p615_p12, %p609_p6 }
  0x1f   : > { %619 = shalt.err (!%p616_p4)
}
  0x20   : > { %s703_s25 = smov 128   ;;  %s704_s5 = smov 8  }
  0x21   : > { %526 = dma.hbm_to_vmem [thread:$0]  (!%p806_p0), %s194_s10, 512, %s196_s12, %s184_s14, %s703_s25, %s703_s25, %s704_s5  }
  0x22   : > { %p203_p13 = scmp.lt.s32.totalorder %s700_s20, 3 }
  0x24   : > { %p204_p2 = pnand %p494_p1, %p203_p13 }
  0x25   : > { %s819_s6 = sand.u32 (!%p204_p2), 1, %s684_s16  }
  0x26   : > { %207 = sbr.rel (%p204_p2) target bundleno = 298 (0x12a), region = 32  ;;  %s495_s7 = sshll.u32 (!%p204_p2), %s819_s6, 5 }
  0x27   : > { %s210_s8 = scalar_lea.sflag (!%p204_p2), [#allocation3], %s819_s6  ;;  %s213_s9 = scalar_lea.vmem (!%p204_p2), [#allocation2], %s495_s7 }
  0x2b   : > { %671 = dma.done.wait (%p782_p8), %s210_s8, 512  }
  0x2c   : > { %673 = vsyncadd (%p782_p8), %s210_s8, 4294966784  ;;  %v705_v0 = vmov 0.0   ;;  %vm706_vm0 = vmmov 0   ;;  %v707_v1 = vmov 0   ;;  %v254_v2 = vld [vmem:[%s213_s9 + $0x18] sm:$0xff]  ;;  %v253_v3 = vld [vmem:[%s213_s9 + $0x10] sm:$0xff]  ;;  %v342_v14 = vlaneseq }
  0x2d   : > { %508 = vmatprep.subr.mxu0 %v705_v0  ;;  %516 = vmatprep.mubr.msk.f32.mxu0 %vm706_vm0, %v705_v0  ;;  %v256_v4 = vld [vmem:[%s887_s2] sm:$0x3f]  ;;  %v252_v5 = vld [vmem:[%s213_s9 + $0x8] sm:$0xff]  ;;  %vm262_vm1 = vcmask 261120   ;;  %p244_p8 = scmp.lt.s32.totalorder %s692_s18, 1  ;;  %v708_v17 = vmov 512.0  }
  0x2e   : > { %587 = vset.pattern.permute.xlu0 %v707_v1  ;;  %509 = vmatpush3.msra.mxu0 %v254_v2  ;;  %v251_v6 = vld [vmem:[%s213_s9] sm:$0xff]  ;;  %v343_v16 = vshrl.u32 %v342_v14, 7  ;;  %s499_s21 = sshll.u32 %s692_s18, 4  ;;  %s234_s22 = scalar_lea.vmem [#allocation5], %s819_s6  ;;  %vm351_vm4 = vcmask 516096   ;;  %vm353_vm5 = vcmask 521217  }
  0x2f   : > { %510 = vmatprep.subr.mxu0 %v705_v0  ;;  %259 = vperm.xlu0 %587, %v256_v4   ;;  %v255_v7 = vld [vmem:[%s886_s1] sm:$0x3f]  ;;  %s245_s13 = scalar_select %p244_p8, %s692_s18, 1 }
  0x30   : > { %511 = vmatpush3.msra.mxu0 %v253_v3  ;;  %vm345_vm2 = vcmp.eq.s32.totalorder %v343_v16, 5  ;;  %vm344_vm3 = vcmp.eq.s32.totalorder %v343_v16, 0  ;;  %s376_s24 = sshll.u32 %s234_s22, 4  ;;  %s843_s9 = scalar_lea.hbm %s888_s3, %s499_s21  ;;  %s377_s24 = int_to_ptr.vmem [resolvable:$true] %s376_s24 }
  0x31   : > { %512 = vmatprep.subr.mxu0 %v705_v0  ;;  %v346_v18 = vsel %vm345_vm2, 3.1415927, %v708_v17  ;;  %s496_s14 = sshll.u32 %s245_s13, 3  ;;  %v348_v21 = vsel %vm345_vm2, -1.5707964, %v705_v0  ;;  %s356_s10 = scalar_lea.sflag [#allocation4], %s819_s6 }
  0x32   : > { %513 = vmatpush3.msra.mxu0 %v252_v5  ;;  %v347_v19 = vsel %vm344_vm3, 1.0, %v346_v18  ;;  %s250_s5 = scalar_lea.vmem %s889_s4, %s496_s14  ;;  %s620_s18 = scalar_lea.vmem %s377_s24, 16 }
  0x33   : > { %514 = vmatprep.subr.mxu0 %v705_v0  ;;  %p621_p12 = scmp.ne.s32.totalorder %s377_s24, %s620_s18  ;;  %s709_s11 = smov [#allocation5]  }
  0x34   : > { %515 = vmatpush3.msra.mxu0 %v251_v6  ;;  %s624_s27 = sshll.u32 %s709_s11, 4  ;;  %s625_s27 = int_to_ptr.vmem [resolvable:$false] %s624_s27 }
  0x35   : > { %517 = vmatmul.mubr.msk.f32.vlgmr.msra.gmra.mxu0 %vm262_vm1, %v255_v7  ;;  %p622_p0 = pnand %p621_p12, %p786_p9  ;;  %s626_s12 = scalar_lea.vmem %s625_s27, 32 }
  0x36   : > { %p627_p3 = scmp.lt.s32.totalorder %s377_s24, %s625_s27  ;;  %p628_p5 = scmp.lt.s32.totalorder %s626_s12, %s620_s18 }
  0x37   : > { %p623_p1 = pneg %p622_p0 }
  0x38   : > { %p629_p6 = por %p628_p5, %p627_p3 }
  0x3a   : > { %p630_p7 = pnand %p629_p6, %p623_p1 }
  0xaa   : > { %v260_v8 = vpop.permute.xlu0 %259 }
  0xf5   : > { %v332_v9 = vpop.f32.mrf.mxu0 }
  0xf6   : > { %v333_v10 = vadd.f32 %v332_v9, %v260_v8 }
  0xf7   : > { %v518_v11 = vpop.f32.mrf.mxu0 }
  0xf8   : > { %v498_v12 = vmul.f32 -1.442695, %v333_v10 }
  0xfa   : > { %588 = vpow2.f32 %v498_v12 }
 0x107   : > { %v589_v13 = vpop.eup %588 }
 0x108   : > { %v339_v15 = vadd.f32 1.0, %v589_v13 }
 0x10a   : > { %590 = vrcp.f32 %v339_v15 }
 0x117   : > { %v591_v20 = vpop.eup %590 }
 0x118   : > { %v349_v22 = vmul.f32 %v591_v20, %v347_v19 }
 0x11a   : > { %v350_v23 = vadd.f32 %v349_v22, %v348_v21 }
 0x11c   : > { %352 = vst.msk [vmem:[%s234_s22] sm:$0x1] %vm351_vm4, %v350_v23 }
 0x11d   : > { %354 = vst.msk [vmem:[%s250_s5 - $0x1] sm:$0x3e] %vm353_vm5, %v350_v23 }
 0x11e   : > { %633 = shalt.err (!%p630_p7)
}
 0x11f   : > { %s634_s13 = scalar_lea.hbm %s843_s9, 16  ;;  %s638_s21 = scalar_lea.hbm %s888_s3, 32 }
 0x120   : > { %p635_p10 = scmp.ne.s32.totalorder %s843_s9, %s634_s13  ;;  %p639_p2 = scmp.lt.s32.totalorder %s843_s9, %s888_s3 }
 0x121   : > { %p640_p8 = scmp.lt.s32.totalorder %s638_s21, %s634_s13 }
 0x122   : > { %p636_p4 = pnand %p635_p10, %p786_p9 }
 0x123   : > { %p641_p12 = por %p640_p8, %p639_p2 }
 0x124   : > { %p637_p13 = pneg %p636_p4 }
 0x126   : > { %p642_p0 = pnand %p641_p12, %p637_p13 }
 0x128   : > { %645 = shalt.err (!%p642_p0)
}
 0x129   : > { %521 = dma.vmem_to_hbm [thread:$0]  (%p786_p9), %s377_s24, 16, %s843_s9, %s356_s10  }
 0x12a PF: > { %s391_s25 = sand.u32 1, %s680_s15   ;;  %p895_p1 = scmp.ge.s32.totalorder %s700_s20, 2 }
 0x12b   : > { %s392_s5 = scalar_lea.sflag [#allocation4], %s391_s25 }
 0x12c   : > { %p528_p3 = pnand %p895_p1, %p793_p11 }
 0x12e   : > { %p529_p5 = pneg %p528_p3 }
 0x130   : > { %675 = dma.done.wait (%p529_p5), %s392_s5, 16  }
 0x131   : > { %677 = vsyncadd (%p529_p5), %s392_s5, 4294967280  ;;  %s21_s20 = sadd.s32 1, %s700_s20   ;;  %s896_s15 = smov %s684_s16 }
 0x132   : > { %p18_p6 = scmp.ge.s32.totalorder %s21_s20, 4   ;;  %s897_s16 = smov %s688_s17 }
 0x133   : > { %s898_s17 = smov %s791_s29  ;;  %s899_s18 = smov %s696_s19 }
 0x134   : > { %s900_s19 = smov %s902_s23  ;;  %20 = sbr.rel (!%p18_p6) target bundleno = 6 (0x6), region = 89 }
 0x139   :  { %406 = vsyncpa [#allocation3], 1 }
 0x13a   :  { %408 = vsyncpa [#allocation3 + $0x1], 1 }
 0x13b   :  { %409 = vsyncpa [#allocation4], 1 }
 0x13c   :  { %411 = vsyncpa [#allocation4 + $0x1], 1 }

</bundles_post_ra>
